<compile_context>
chip_gen: v7x
topology: tpu7x:2x2x1
jax: 0.10.0
libtpu: 0.0.40
codegen_flags: <defaults>
</compile_context>

<pallas_src>
import functools

import jax
import jax.numpy as jnp
from jax import lax
from jax.experimental import pallas as pl
from jax.experimental.pallas import tpu as pltpu

_EPS_BN = 1e-5
_BIG = 1e30
_VMEM = pl.BlockSpec(memory_space=pltpu.MemorySpace.VMEM)
_SMEM = pl.BlockSpec(memory_space=pltpu.MemorySpace.SMEM)
_CPARAMS = pltpu.CompilerParams(vmem_limit_bytes=32 * 1024 * 1024)


# --------------------------- in-kernel helpers ----------------------------- #

def _leaky(h):
    return jnp.where(h > 0, h, 0.2 * h)


def _lane_iota_f32(shape):
    return lax.broadcasted_iota(jnp.int32, shape, len(shape) - 1).astype(jnp.float32)


def _col_to_row(col, n):
    """(n, 1) -> (1, n) without an XLU transpose: scatter to the diagonal, reduce sublanes."""
    ir = lax.broadcasted_iota(jnp.int32, (n, n), 0)
    ic = lax.broadcasted_iota(jnp.int32, (n, n), 1)
    return jnp.sum(jnp.where(ir == ic, col, 0.0), axis=0, keepdims=True)


def _cross_sqdist(a, b_t, dims):
    """Exact pairwise squared distances on the VPU.  a:(M,Da), b_t:(Db,N) -> (M,N)."""
    d = jnp.zeros((a.shape[0], b_t.shape[1]), jnp.float32)
    for j in dims:
        diff = a[:, j:j + 1] - b_t[j:j + 1, :]
        d = d + diff * diff
    return d


def _self_sqdist(s):
    """Exact pairwise squared distances among rows of s:(K,3) -> (K,K), VPU only."""
    k = s.shape[0]
    d = jnp.zeros((k, k), jnp.float32)
    for j in range(s.shape[1]):
        col = s[:, j:j + 1]
        diff = col - _col_to_row(col, k)
        d = d + diff * diff
    return d


def _knn_max(d, k_nn, gather_fn):
    """Fused k-NN selection + one-hot gather + channelwise max (VMEM resident).

    d: (Q, N) squared distances (consumed).  For each of the k_nn nearest columns
    a one-hot (Q, N) is built and handed to gather_fn (gathers via MXU matmul);
    gather_fn returns a tuple of (Q, C) arrays that are max-accumulated.
    """
    q, n = d.shape
    lane = _lane_iota_f32((q, n))
    acc = None
    for _ in range(k_nn):
        dmin = jnp.min(d, axis=1, keepdims=True)
        sel = jnp.min(jnp.where(d == dmin, lane, float(n)), axis=1, keepdims=True)
        onehot = jnp.where(lane == sel, 1.0, 0.0)
        vals = gather_fn(onehot)
        acc = vals if acc is None else tuple(jnp.maximum(a, v) for a, v in zip(acc, vals))
        d = jnp.where(lane == sel, _BIG, d)
    return acc


# ------------------------------ FPS kernel --------------------------------- #

def _fps_kernel(xyz_ref, out_ref, dist_ref):
    """Greedy furthest point sampling; xyz + running min-distance stay in VMEM."""
    n = xyz_ref.shape[0]
    npoint = out_ref.shape[0]
    out_ref[0] = jnp.int32(0)
    dist_ref[...] = jnp.full((n, 1), 1e10, jnp.float32)
    row_idx = lax.broadcasted_iota(jnp.int32, (n, 1), 0).astype(jnp.float32)

    def body(i, last):
        p = xyz_ref[pl.ds(last, 1), :]                       # (1, 3)
        diff = xyz_ref[...] - p
        d = jnp.sum(diff * diff, axis=1, keepdims=True)      # (n, 1)
        dmin = jnp.minimum(dist_ref[...], d)
        dist_ref[...] = dmin
        far = jnp.max(dmin)
        nxt = jnp.min(jnp.where(dmin == far, row_idx, float(n))).astype(jnp.int32)
        out_ref[i] = nxt
        return nxt

    lax.fori_loop(1, npoint, body, jnp.int32(0))


def furthest_point_sample(xyz, npoint):
    """pointnet2 CUDA FPS equivalent: idx[0] = 0, then greedy farthest-first."""
    n = xyz.shape[0]
    return pl.pallas_call(
        _fps_kernel,
        out_shape=jax.ShapeDtypeStruct((npoint,), jnp.int32),
        in_specs=[_VMEM],
        out_specs=_SMEM,
        scratch_shapes=[pltpu.VMEM((n, 1), jnp.float32)],
        compiler_params=_CPARAMS,
    )(xyz)


# ------------------------- fused BEV interpolation -------------------------- #

def _bev_kernel(h_bev, w_bev, x_ref, y_ref, im_ref, woff_ref, o_ref):
    """Fused: bilinear lookup -> merged pred/mod offset head -> deformed lookup."""
    # TODO(synk): for production BEV sizes (H*W ~ 40k, C >= 128) replace the one-hot
    # matmul gather with a scalar-prefetch / DMA row gather and a parallel K grid.
    im = im_ref[...]                          # (H*W, C)
    x = x_ref[...]                            # (K, 1)
    y = y_ref[...]
    k = x.shape[0]
    hw = im.shape[0]
    lane = _lane_iota_f32((k, hw))

    def bilerp(xq, yq):
        x0 = jnp.clip(jnp.floor(xq), 0.0, w_bev - 1.0)
        x1 = jnp.clip(jnp.floor(xq) + 1.0, 0.0, w_bev - 1.0)
        y0 = jnp.clip(jnp.floor(yq), 0.0, h_bev - 1.0)
        y1 = jnp.clip(jnp.floor(yq) + 1.0, 0.0, h_bev - 1.0)
        wa = (x1 - xq) * (y1 - yq)
        wb = (x1 - xq) * (yq - y0)
        wc = (xq - x0) * (y1 - yq)
        wd = (xq - x0) * (yq - y0)
        taps = (jnp.where(lane == y0 * w_bev + x0, wa, 0.0)
                + jnp.where(lane == y1 * w_bev + x0, wb, 0.0)
                + jnp.where(lane == y0 * w_bev + x1, wc, 0.0)
                + jnp.where(lane == y1 * w_bev + x1, wd, 0.0))
        return jnp.dot(taps, im, preferred_element_type=jnp.float32)

    feat = bilerp(x, y)                                                        # (K, C)
    head = jnp.dot(feat, woff_ref[...], preferred_element_type=jnp.float32)    # (K, 3)
    off = jnp.tanh(head[:, 0:2]) * head[:, 2:3]                                # (K, 2)
    x2 = jnp.clip(x + off[:, 0:1], 0.0, w_bev)      # torch clamps to shape[3]/shape[2]
    y2 = jnp.clip(y + off[:, 1:2], 0.0, h_bev)
    o_ref[...] = bilerp(x2, y2)


def interpolate_from_bev_features(keypoints, bev_features, woff,
                                  voxel_size, point_cloud_range, bev_stride):
    """keypoints:(K,3); bev_features:(1,C,H,W) NCHW; woff:(C,3) merged offset head."""
    _, c, h, w = bev_features.shape
    k = keypoints.shape[0]
    x_idxs = (keypoints[:, 0] - point_cloud_range[0]) / voxel_size[0] / bev_stride
    y_idxs = (keypoints[:, 1] - point_cloud_range[1]) / voxel_size[1] / bev_stride
    im = jnp.transpose(bev_features[0], (1, 2, 0)).reshape(h * w, c)
    return pl.pallas_call(
        functools.partial(_bev_kernel, float(h), float(w)),
        out_shape=jax.ShapeDtypeStruct((k, c), jnp.float32),
        in_specs=[_VMEM] * 4,
        out_specs=_VMEM,
        compiler_params=_CPARAMS,
    )(x_idxs.reshape(k, 1).astype(jnp.float32),
      y_idxs.reshape(k, 1).astype(jnp.float32),
      im, woff)


# ----------------------- fused raw_points DGCNN branch ---------------------- #

def _raw_branch_kernel(k_nn,
                       kp6_ref, raw6_ref, raw6t_ref,
                       w7_ref, b7_ref, w8a_ref, w8b_ref, b8_ref,
                       wn1a_ref, wn1c_ref, ws1a_ref, ws1c_ref, b1_ref,
                       wn2_ref, ws2_ref, b2_ref,
                       wn3_ref, ws3_ref, b3_ref,
                       wn4_ref, ws4_ref, b4_ref,
                       w6a_ref, w6b_ref, w6c_ref, w6d_ref, b6_ref,
                       o_ref):
    """Entire 'raw_points' DGCNN branch in one VMEM-resident kernel.

    Each edge conv (cat(nb-x, x) @ W) is rewritten as A[nbr] + B with
    A = x @ Wn, B = x @ Wself (BN scale folded into the weights), so every layer
    is two full-width MXU matmuls plus a fused knn-select / one-hot-gather / max.
    """
    # TODO(synk): at production sizes (N ~ 16-64k raw points) the (K, N) distance
    # matrix should be streamed with a BlockSpec grid over N instead of held whole.
    kp6 = kp6_ref[...]          # (K, 6) = [x, y, z, c1, c2, c3]
    raw6 = raw6_ref[...]        # (N, 6)
    raw6_t = raw6t_ref[...]     # (6, N)
    kp_col = kp6[:, 3:6]
    raw_col = raw6[:, 3:6]
    b7 = b7_ref[...]

    # ---- conv7 / conv8 gating head (single conv7 matmul shared via gather) ----
    c7_tab = jnp.dot(raw_col, w7_ref[...], preferred_element_type=jnp.float32)    # (N, 6)
    d_col = _cross_sqdist(kp6, raw6_t, range(3, 6))                               # (K, N)
    (near_c,) = _knn_max(
        d_col, k_nn,
        lambda oh: (_leaky(jnp.dot(oh, c7_tab, preferred_element_type=jnp.float32) + b7),))
    feat_c6 = _leaky(jnp.dot(kp_col, w7_ref[...], preferred_element_type=jnp.float32) + b7)
    gate = jax.nn.sigmoid(
        jnp.dot(feat_c6, w8a_ref[...], preferred_element_type=jnp.float32)
        + jnp.dot(near_c, w8b_ref[...], preferred_element_type=jnp.float32)
        + b8_ref[...])                                                            # (K, 3)

    # ---- 10 nearest raw points (6-D metric): gate colors, channelwise max ----
    d_raw = _cross_sqdist(kp6, raw6_t, range(6))                                  # (K, N)

    def gated_neighbors(oh):
        nb = jnp.dot(oh, raw6, preferred_element_type=jnp.float32)                # (K, 6)
        return gate * nb[:, 3:6], nb[:, 0:3]

    wcol, xyz = _knn_max(d_raw, k_nn, gated_neighbors)                            # (K,3) x2

    # ---- DGCNN edge convolutions ----
    def edge_layer(knn_src3, a_tab, b_self, bias):
        d = _self_sqdist(knn_src3)
        (out,) = _knn_max(
            d, k_nn,
            lambda oh: (_leaky(jnp.dot(oh, a_tab, preferred_element_type=jnp.float32)
                               + b_self + bias),))
        return out

    # layer 1 (get_graph_feature_w): knn on the gated-color channels.
    a1 = (jnp.dot(wcol, wn1a_ref[...], preferred_element_type=jnp.float32)
          + jnp.dot(xyz, wn1c_ref[...], preferred_element_type=jnp.float32))
    s1 = (jnp.dot(wcol, ws1a_ref[...], preferred_element_type=jnp.float32)
          + jnp.dot(xyz, ws1c_ref[...], preferred_element_type=jnp.float32))
    x_w = edge_layer(wcol, a1, s1, b1_ref[...])                                   # (K, 64)

    # layers 2-4 (get_graph_feature): knn on the first 3 feature channels.
    def dg_layer(x, wn_ref, ws_ref, bias_ref):
        a = jnp.dot(x, wn_ref[...], preferred_element_type=jnp.float32)
        s = jnp.dot(x, ws_ref[...], preferred_element_type=jnp.float32)
        return edge_layer(x[:, 0:3], a, s, bias_ref[...])

    x2 = dg_layer(x_w, wn2_ref, ws2_ref, b2_ref)                                  # (K, 64)
    x3 = dg_layer(x2, wn3_ref, ws3_ref, b3_ref)                                   # (K, 128)
    x4 = dg_layer(x3, wn4_ref, ws4_ref, b4_ref)                                   # (K, 256)

    # conv6 over the (virtual) concat [x_w, x2, x3, x4] via row-split weights.
    h6 = (jnp.dot(x_w, w6a_ref[...], preferred_element_type=jnp.float32)
          + jnp.dot(x2, w6b_ref[...], preferred_element_type=jnp.float32)
          + jnp.dot(x3, w6c_ref[...], preferred_element_type=jnp.float32)
          + jnp.dot(x4, w6d_ref[...], preferred_element_type=jnp.float32)
          + b6_ref[...])
    o_ref[...] = _leaky(h6)                                                       # (K, 32)


def bn_fold(c):
    gamma = jnp.ones((c,), jnp.float32)
    beta = jnp.zeros((c,), jnp.float32)
    mean = jnp.zeros((c,), jnp.float32)
    var = jnp.ones((c,), jnp.float32)
    scale = gamma / jnp.sqrt(var + _EPS_BN)
    return scale, beta - mean * scale


def raw_points_branch(kp6, raw6, params, k_nn=10):
    """Single fused Pallas call for the DGCNN 'raw_points' feature source."""
    kk = kp6.shape[0]

    def fold(w):
        cout = w.shape[1]
        scale, shift = bn_fold(cout)
        return w * scale[None, :], shift.reshape(1, cout)

    w1, b1 = fold(params['conv1'])   # (9, 64)
    w2, b2 = fold(params['conv2'])   # (128, 64)
    w3, b3 = fold(params['conv3'])   # (128, 128)
    w4, b4 = fold(params['conv4'])   # (256, 256)
    w6, b6 = fold(params['conv6'])   # (512, 32)
    w7, b7 = fold(params['conv7'])   # (3, 6)
    w8, b8 = fold(params['conv8'])   # (12, 3)

    # (nb - x) @ Wn + x @ Wc  ==  (x @ Wn)[nbr] + x @ (Wc - Wn)
    wn1a, wn1c = w1[0:3], w1[6:9]                 # neighbor part of [nb_p-xp, xp, nb_c-xc]
    ws1a, ws1c = w1[3:6] - w1[0:3], -w1[6:9]      # self part
    wn2, ws2 = w2[0:64], w2[64:128] - w2[0:64]
    wn3, ws3 = w3[0:64], w3[64:128] - w3[0:64]
    wn4, ws4 = w4[0:128], w4[128:256] - w4[0:128]
    w6a, w6b, w6c, w6d = w6[0:64], w6[64:128], w6[128:256], w6[256:512]
    w8a, w8b = w8[0:6], w8[6:12]

    c_out = params['conv6'].shape[1]
    return pl.pallas_call(
        functools.partial(_raw_branch_kernel, k_nn),
        out_shape=jax.ShapeDtypeStruct((kk, c_out), jnp.float32),
        in_specs=[_VMEM] * 27,
        out_specs=_VMEM,
        compiler_params=_CPARAMS,
    )(kp6, raw6, raw6.T,
      w7, b7, w8a, w8b, b8,
      wn1a, wn1c, ws1a, ws1c, b1,
      wn2, ws2, b2,
      wn3, ws3, b3,
      wn4, ws4, b4,
      w6a, w6b, w6c, w6d, b6)


# --------------------------- fusion linear layer ---------------------------- #

def _linear_relu_kernel(x_ref, w_ref, b_ref, o_ref):
    h = jnp.dot(x_ref[...], w_ref[...], preferred_element_type=jnp.float32) + b_ref[...]
    o_ref[...] = jnp.maximum(h, 0.0)


def linear_bn_relu(x, w):
    cout = w.shape[1]
    scale, shift = bn_fold(cout)
    return pl.pallas_call(
        _linear_relu_kernel,
        out_shape=jax.ShapeDtypeStruct((x.shape[0], cout), jnp.float32),
        in_specs=[_VMEM] * 3,
        out_specs=_VMEM,
        compiler_params=_CPARAMS,
    )(x, w * scale[None, :], shift.reshape(1, cout))


# --------------------------------- model ------------------------------------ #

class DefVoxelSetAbstraction:
    """FEATURES_SOURCE = ['bev', 'raw_points'], POINT_SOURCE='raw_points', FPS sampling."""

    def __init__(self, params, voxel_size, point_cloud_range,
                 num_bev_features, num_keypoints, num_output_features):
        self.params = params
        self.voxel_size = voxel_size
        self.point_cloud_range = point_cloud_range
        self.num_bev_features = num_bev_features
        self.num_keypoints = num_keypoints
        self.num_point_features = num_output_features

    def get_sampled_points(self, batch_dict):
        points = batch_dict['points']                     # (N, 7): [bs, x, y, z, c1, c2, c3]
        src = points[:, 1:7]
        idx = furthest_point_sample(src[:, :3], self.num_keypoints)
        return src[idx][None]                             # (1, K, 6)

    def forward(self, batch_dict):
        keypoints1 = self.get_sampled_points(batch_dict)  # (1, K, 6)
        keypoints = keypoints1[:, :, 0:3]
        kp6 = keypoints1[0]
        feats = []

        # ---- 'bev' source (fused: interp -> merged offset head -> deformed interp) ----
        woff = jnp.concatenate(
            [self.params['pred_bev_offset'], self.params['mod_bev_offset']], axis=1)
        bev_feat = interpolate_from_bev_features(
            keypoints[0], batch_dict['spatial_features'], woff,
            self.voxel_size, self.point_cloud_range,
            batch_dict['spatial_features_stride'])
        feats.append(bev_feat[None])

        # ---- 'raw_points' source (fully fused DGCNN branch) ----
        raw6 = batch_dict['points'][:, 1:7]
        pooled = raw_points_branch(kp6, raw6, self.params, k_nn=10)
        feats.append(pooled[None])

        # TODO(synk): SA_layers (pointnet2_stack StackSAModuleMSG / MSGAdapt / MSGGated
        # ball-query+grouping on sparse multi_scale_3d_features) have no Pallas
        # equivalent here and are omitted (FEATURES_SOURCE restricted to ['bev','raw_points']).

        point_features = jnp.concatenate(feats, axis=2)                 # (1, K, c_in)
        b, k, c_in = point_features.shape
        batch_idx = jnp.repeat(jnp.arange(b, dtype=jnp.float32), k).reshape(-1, 1)
        point_coords = jnp.concatenate([batch_idx, keypoints.reshape(-1, 3)], axis=1)
        before = point_features.reshape(-1, c_in)
        fused = linear_bn_relu(before, self.params['fusion'])           # (B*K, 32)

        batch_dict['point_features_before_fusion'] = before
        batch_dict['point_features'] = fused
        batch_dict['point_coords'] = point_coords
        return batch_dict


def init_params(key, c_bev, c_in_fusion, c_out):
    ks = jax.random.split(key, 10)

    def w(k, cin, cout):
        return jax.random.normal(k, (cin, cout), jnp.float32) * 0.1

    return {
        'conv1': w(ks[0], 9, 64),
        'conv2': w(ks[1], 128, 64),
        'conv3': w(ks[2], 128, 128),
        'conv4': w(ks[3], 256, 256),
        'conv6': w(ks[4], 512, 32),
        'conv7': w(ks[5], 3, 6),
        'conv8': w(ks[6], 12, 3),
        'pred_bev_offset': w(ks[7], c_bev, 2),
        'mod_bev_offset': w(ks[8], c_bev, 1),
        'fusion': w(ks[9], c_in_fusion, c_out),
    }


if __name__ == "__main__":
    key = jax.random.PRNGKey(0)
    k_pts, k_col, k_bev = jax.random.split(key, 3)

    voxel_size = (0.05, 0.05, 0.1)
    point_cloud_range = (0.0, 0.0, -1.0, 6.4, 6.4, 1.0)
    n_raw, num_keypoints = 128, 32
    c_bev, h_bev, w_bev, bev_stride = 32, 16, 16, 8

    xyz = jax.random.uniform(k_pts, (n_raw, 3), minval=0.2, maxval=6.2)
    col = jax.random.uniform(k_col, (n_raw, 3))
    points = jnp.concatenate(
        [jnp.zeros((n_raw, 1)), xyz, col], axis=1).astype(jnp.float32)          # (N, 7)
    spatial_features = jax.random.normal(
        k_bev, (1, c_bev, h_bev, w_bev), jnp.float32)                           # NCHW

    params = init_params(jax.random.PRNGKey(42), c_bev=c_bev,
                         c_in_fusion=c_bev + 32, c_out=32)
    model = DefVoxelSetAbstraction(params, voxel_size, point_cloud_range,
                                   num_bev_features=c_bev,
                                   num_keypoints=num_keypoints,
                                   num_output_features=32)

    batch_dict = {
        'batch_size': 1,
        'points': points,
        'spatial_features': spatial_features,
        'spatial_features_stride': bev_stride,
    }
    out = model.forward(batch_dict)
    jax.block_until_ready(out['point_features'])
    jax.block_until_ready(out['point_coords'])
    jax.block_until_ready(out['point_features_before_fusion'])

    assert out['point_features'].shape == (num_keypoints, 32)
    assert out['point_features_before_fusion'].shape == (num_keypoints, c_bev + 32)
    assert out['point_coords'].shape == (num_keypoints, 4)
    print("KERNEL_OK")
</pallas_src>

<mosaic_0001>
module attributes {stable_mosaic.version = 11 : i64} {
  func.func @_fps_kernel(%arg0: memref<128x3xf32, #tpu.memory_space<vmem>>, %arg1: memref<32xi32, #tpu.memory_space<smem>>, %arg2: memref<128x1xf32, #tpu.memory_space<vmem>>) attributes {dimension_semantics = [], scalar_prefetch = 0 : i64, scratch_operands = 1 : i64, tpu.core_type = #tpu.core_type<tc>} {
    %c0_i32 = arith.constant 0 : i32
    %c0 = arith.constant 0 : index
    %0 = memref.load %arg1[%c0] : memref<32xi32, #tpu.memory_space<smem>>
    memref.store %c0_i32, %arg1[%c0] : memref<32xi32, #tpu.memory_space<smem>>
    %cst = arith.constant 1.000000e+10 : f32
    %1 = vector.broadcast %cst : f32 to vector<128x1xf32>
    %c0_0 = arith.constant 0 : index
    %c0_1 = arith.constant 0 : index
    %2 = vector.load %arg2[%c0_0, %c0_1] : memref<128x1xf32, #tpu.memory_space<vmem>>, vector<128x1xf32>
    tpu.vector_store %arg2[%c0_0, %c0_1], %1 {strides = array<i32>} : memref<128x1xf32, #tpu.memory_space<vmem>>, vector<128x1xf32>,
    %3 = tpu.iota {dimensions = array<i32: 0>} : vector<128x1xi32>
    %4 = arith.sitofp %3 : vector<128x1xi32> to vector<128x1xf32>
    %c0_i32_2 = arith.constant 0 : i32
    %c1_i32 = arith.constant 1 : i32
    %c31_i32 = arith.constant 31 : i32
    %5 = arith.addi %c1_i32, %c31_i32 : i32
    %c1_i32_3 = arith.constant 1 : i32
    %6 = scf.for %arg3 = %c1_i32 to %5 step %c1_i32_3 iter_args(%arg4 = %c0_i32_2) -> (i32)  : i32 {
      %7 = arith.index_cast %arg4 : i32 to index
      %c0_5 = arith.constant 0 : index
      %8 = vector.load %arg0[%7, %c0_5] : memref<128x3xf32, #tpu.memory_space<vmem>>, vector<1x3xf32>
      %c0_6 = arith.constant 0 : index
      %c0_7 = arith.constant 0 : index
      %9 = vector.load %arg0[%c0_6, %c0_7] : memref<128x3xf32, #tpu.memory_space<vmem>>, vector<128x3xf32>
      %10 = vector.broadcast %8 : vector<1x3xf32> to vector<128x3xf32>
      %11 = arith.subf %9, %10 : vector<128x3xf32>
      %12 = arith.mulf %11, %11 : vector<128x3xf32>
      %cst_8 = arith.constant dense<0.000000e+00> : vector<128xf32>
      %13 = vector.multi_reduction <add>, %12, %cst_8 [1] : vector<128x3xf32> to vector<128xf32>
      %14 = vector.shape_cast %13 : vector<128xf32> to vector<128x1xf32>
      %c0_9 = arith.constant 0 : index
      %c0_10 = arith.constant 0 : index
      %15 = vector.load %arg2[%c0_9, %c0_10] : memref<128x1xf32, #tpu.memory_space<vmem>>, vector<128x1xf32>
      %16 = arith.minimumf %15, %14 : vector<128x1xf32>
      %c0_11 = arith.constant 0 : index
      %c0_12 = arith.constant 0 : index
      %17 = vector.load %arg2[%c0_11, %c0_12] : memref<128x1xf32, #tpu.memory_space<vmem>>, vector<128x1xf32>
      tpu.vector_store %arg2[%c0_11, %c0_12], %16 {strides = array<i32>} : memref<128x1xf32, #tpu.memory_space<vmem>>, vector<128x1xf32>,
      %18 = vector.shape_cast %16 : vector<128x1xf32> to vector<1x128x1xf32>
      %cst_13 = arith.constant dense<0xFF800000> : vector<1xf32>
      %19 = vector.multi_reduction <maximumf>, %18, %cst_13 [1, 2] : vector<1x128x1xf32> to vector<1xf32>
      %20 = vector.shape_cast %19 : vector<1xf32> to vector<1x1x1xf32>
      %21 = vector.extract %20[0, 0, 0] : f32 from vector<1x1x1xf32>
      %22 = vector.broadcast %21 : f32 to vector<128x1xf32>
      %23 = arith.cmpf oeq, %16, %22 : vector<128x1xf32>
      %cst_14 = arith.constant 1.280000e+02 : f32
      %24 = vector.broadcast %cst_14 : f32 to vector<128x1xf32>
      %25 = arith.select %23, %4, %24 : vector<128x1xi1>, vector<128x1xf32>
      %26 = vector.shape_cast %25 : vector<128x1xf32> to vector<1x128x1xf32>
      %cst_15 = arith.constant dense<0x7F800000> : vector<1xf32>
      %27 = vector.multi_reduction <minimumf>, %26, %cst_15 [1, 2] : vector<1x128x1xf32> to vector<1xf32>
      %28 = vector.shape_cast %27 : vector<1xf32> to vector<1x1x1xf32>
      %29 = vector.extract %28[0, 0, 0] : f32 from vector<1x1x1xf32>
      %30 = arith.fptosi %29 : f32 to i32
      %31 = arith.index_cast %arg3 : i32 to index
      %32 = memref.load %arg1[%31] : memref<32xi32, #tpu.memory_space<smem>>
      memref.store %30, %arg1[%31] : memref<32xi32, #tpu.memory_space<smem>>
      scf.yield %30 : i32
    }
    %c31_i32_4 = arith.constant 31 : i32
    return
  }
}

</mosaic_0001>

<bundles_post_ra>
// kernel: tpu_custom_call.1
= control target key start
LH: loop header
LB: loop body
LE: loop exit
PB: predicated region body
PF: predicated region fallthrough
CT: control target
= control target key end

     0   :  { %6 = vsyncpa [#allocation4], 0  ;;  %vm782_vm0 = vcmask 7168   ;;  %v28_v0 = vlaneseq  ;;  %s415_s6 = smov 0   ;;  %v416_v1 = vmov 1e+10   ;;  %s780_s0 = inlined_call_operand.vmem [shape: f32[128,3], index: 0, kind: input, shape index: {}]   ;;  %s781_s1 = inlined_call_operand.hbm [shape: s32[32], index: 1, kind: output, shape index: {}]  }
   0x1   :  { %10 = sst [smem:[#allocation3]] %s415_s6  ;;  %12 = vst.msk [vmem:[#allocation2] sm:$0xff] %vm782_vm0, %v416_v1  ;;  %13 = vst.msk [vmem:[#allocation2 + $0x8] sm:$0xff] %vm782_vm0, %v416_v1  ;;  %s507_s7 = smov 0  }
   0x2   :  { %14 = vst.msk [vmem:[#allocation2 + $0x10] sm:$0xff] %vm782_vm0, %v416_v1  ;;  %15 = vst.msk [vmem:[#allocation2 + $0x18] sm:$0xff] %vm782_vm0, %v416_v1  ;;  %v444_v2 = vshrl.u32 %v28_v0, 7  ;;  %s509_s8 = smov 1  }
   0x3   :  { %16 = vst.msk [vmem:[#allocation2 + $0x20] sm:$0xff] %vm782_vm0, %v416_v1  ;;  %17 = vst.msk [vmem:[#allocation2 + $0x28] sm:$0xff] %vm782_vm0, %v416_v1 }
   0x4   :  { %18 = vst.msk [vmem:[#allocation2 + $0x30] sm:$0xff] %vm782_vm0, %v416_v1  ;;  %19 = vst.msk [vmem:[#allocation2 + $0x38] sm:$0xff] %vm782_vm0, %v416_v1  ;;  %v447_v3 = vadd.s32 8, %v444_v2  ;;  %v450_v4 = vadd.s32 16, %v444_v2  ;;  %v453_v5 = vadd.s32 24, %v444_v2  ;;  %v456_v6 = vadd.s32 32, %v444_v2 }
   0x5   :  { %20 = vst.msk [vmem:[#allocation2 + $0x40] sm:$0xff] %vm782_vm0, %v416_v1  ;;  %21 = vst.msk [vmem:[#allocation2 + $0x48] sm:$0xff] %vm782_vm0, %v416_v1  ;;  %v459_v7 = vadd.s32 40, %v444_v2  ;;  %v462_v8 = vadd.s32 48, %v444_v2  ;;  %v465_v9 = vadd.s32 56, %v444_v2  ;;  %v468_v10 = vadd.s32 64, %v444_v2 }
   0x6   :  { %22 = vst.msk [vmem:[#allocation2 + $0x50] sm:$0xff] %vm782_vm0, %v416_v1  ;;  %23 = vst.msk [vmem:[#allocation2 + $0x58] sm:$0xff] %vm782_vm0, %v416_v1  ;;  %v471_v11 = vadd.s32 72, %v444_v2  ;;  %v474_v12 = vadd.s32 80, %v444_v2  ;;  %v477_v13 = vadd.s32 88, %v444_v2  ;;  %v480_v14 = vadd.s32 96, %v444_v2 }
   0x7   :  { %24 = vst.msk [vmem:[#allocation2 + $0x60] sm:$0xff] %vm782_vm0, %v416_v1  ;;  %25 = vst.msk [vmem:[#allocation2 + $0x68] sm:$0xff] %vm782_vm0, %v416_v1  ;;  %v483_v15 = vadd.s32 104, %v444_v2  ;;  %v486_v16 = vadd.s32 112, %v444_v2  ;;  %v489_v17 = vadd.s32 120, %v444_v2  ;;  %v45_v18 = vcvt.s32.f32 %v444_v2 }
   0x8   :  { %26 = vst.msk [vmem:[#allocation2 + $0x70] sm:$0xff] %vm782_vm0, %v416_v1  ;;  %27 = vst.msk [vmem:[#allocation2 + $0x78] sm:$0xff] %vm782_vm0, %v416_v1  ;;  %v46_v19 = vcvt.s32.f32 %v447_v3  ;;  %v47_v20 = vcvt.s32.f32 %v450_v4  ;;  %v48_v21 = vcvt.s32.f32 %v453_v5  ;;  %v49_v22 = vcvt.s32.f32 %v456_v6 }
   0x9   :  { %v50_v23 = vcvt.s32.f32 %v459_v7 }
   0xa LB: > { %v72_v34 = vld [vmem:[%s780_s0 + $0x10] sm:$0xff]  ;;  %v70_v35 = vld [vmem:[%s780_s0] sm:$0xff]  ;;  %v73_v36 = vld [vmem:[%s780_s0 + $0x18] sm:$0xff]  ;;  %s68_s19 = scalar_lea.vmem %s780_s0, %s409_s7  ;;  %vm122_vm1 = vcmask 23552   ;;  %vm783_vm0 = vcmask 7168   ;;  %s333_s20 = scalar_lea.smem [#allocation3], %s413_s8  ;;  %s413_s8 = sphi %s509_s8, %s66_s8   ;;  %s409_s7 = sphi %s507_s7, %s367_s7  }
   0xb   : > { %v71_v37 = vld [vmem:[%s780_s0 + $0x8] sm:$0xff]  ;;  %v74_v39 = vld [vmem:[%s780_s0 + $0x20] sm:$0xff]  ;;  %v77_v51 = vld [vmem:[%s780_s0 + $0x38] sm:$0xff]  ;;  %s66_s8 = sadd.s32 1, %s413_s8  }
   0xc   : > { %v75_v38 = vld [vmem:[%s780_s0 + $0x28] sm:$0xff]  ;;  %v358_v40 = vld [vmem:[%s68_s19] ss:$0 sm:$0xff]  ;;  %v76_v52 = vld [vmem:[%s780_s0 + $0x30] sm:$0xff]  ;;  %p63_p1 = scmp.ge.s32.totalorder %s66_s8, 32  }
   0xd   : > { %v92_v41 = vsub.f32 %v72_v34, %v358_v40  ;;  %v90_v42 = vsub.f32 %v70_v35, %v358_v40  ;;  %v93_v43 = vsub.f32 %v73_v36, %v358_v40  ;;  %v91_v44 = vsub.f32 %v71_v37, %v358_v40  ;;  %v79_v61 = vld [vmem:[%s780_s0 + $0x48] sm:$0xff]  ;;  %v78_v62 = vld [vmem:[%s780_s0 + $0x40] sm:$0xff]  ;;  %v81_v37 = vld [vmem:[%s780_s0 + $0x58] sm:$0xff]  ;;  %s387_s23 = scalar_lea.hbm (%p63_p1), %s781_s1, 16 }
   0xe   : > { %v95_v45 = vsub.f32 %v75_v38, %v358_v40  ;;  %v94_v46 = vsub.f32 %v74_v39, %v358_v40  ;;  %v97_v55 = vsub.f32 %v77_v51, %v358_v40  ;;  %v96_v56 = vsub.f32 %v76_v52, %v358_v40  ;;  %v80_v38 = vld [vmem:[%s780_s0 + $0x50] sm:$0xff]  ;;  %p388_p2 = scmp.ne.s32.totalorder (%p63_p1), %s781_s1, %s387_s23  ;;  %p391_p3 = scmp.lt.u32.totalorder (%p63_p1), %s387_s23, %s781_s1 }
   0xf   : > { %v108_v47 = vmul.f32 %v92_v41, %v92_v41  ;;  %v106_v48 = vmul.f32 %v90_v42, %v90_v42  ;;  %v109_v49 = vmul.f32 %v93_v43, %v93_v43  ;;  %v107_v50 = vmul.f32 %v91_v44, %v91_v44 }
  0x10   : > { %v111_v59 = vmul.f32 %v95_v45, %v95_v45  ;;  %v110_v60 = vmul.f32 %v94_v46, %v94_v46  ;;  %v113_v63 = vmul.f32 %v97_v55, %v97_v55  ;;  %v112_v0 = vmul.f32 %v96_v56, %v96_v56  ;;  %v83_v46 = vld [vmem:[%s780_s0 + $0x68] sm:$0xff]  ;;  %v84_v55 = vld [vmem:[%s780_s0 + $0x70] sm:$0xff]  ;;  %p393_p4 = pnand (%p63_p1), %p391_p3, %p388_p2 }
  0x11   : > { %v129_v53 = vsel %vm122_vm1, %v108_v47, 0.0  ;;  %v123_v54 = vsel %vm122_vm1, %v106_v48, 0.0  ;;  %v132_v57 = vsel %vm122_vm1, %v109_v49, 0.0  ;;  %v126_v58 = vsel %vm122_vm1, %v107_v50, 0.0  ;;  %v82_v47 = vld [vmem:[%s780_s0 + $0x60] sm:$0xff] }
  0x12   : > { %130 = vadd.xlane.f32.xlu1 %v129_v53  ;;  %124 = vadd.xlane.f32.xlu0 %v123_v54  ;;  %v138_v1 = vsel %vm122_vm1, %v111_v59, 0.0  ;;  %v135_v34 = vsel %vm122_vm1, %v110_v60, 0.0  ;;  %v99_v35 = vsub.f32 %v79_v61, %v358_v40  ;;  %v98_v36 = vsub.f32 %v78_v62, %v358_v40  ;;  %v85_v54 = vld [vmem:[%s780_s0 + $0x78] sm:$0xff] }
  0x13   : > { %v144_v39 = vsel %vm122_vm1, %v113_v63, 0.0  ;;  %v141_v41 = vsel %vm122_vm1, %v112_v0, 0.0  ;;  %v101_v44 = vsub.f32 %v81_v37, %v358_v40  ;;  %v100_v45 = vsub.f32 %v80_v38, %v358_v40 }
  0x14   : > { %v115_v42 = vmul.f32 %v99_v35, %v99_v35  ;;  %v114_v43 = vmul.f32 %v98_v36, %v98_v36  ;;  %v103_v48 = vsub.f32 %v83_v46, %v358_v40  ;;  %v102_v49 = vsub.f32 %v82_v47, %v358_v40  ;;  %v173_v35 = vld [vmem:[#allocation2 + $0x10] sm:$0xff]  ;;  %v171_v36 = vld [vmem:[#allocation2] sm:$0xff] }
  0x15   : > { %v117_v52 = vmul.f32 %v101_v44, %v101_v44  ;;  %v116_v53 = vmul.f32 %v100_v45, %v100_v45  ;;  %v105_v56 = vsub.f32 %v85_v54, %v358_v40  ;;  %v178_v54 = vld [vmem:[#allocation2 + $0x38] sm:$0xff] }
  0x16   : > { %133 = vadd.xlane.f32.xlu1 %v132_v57  ;;  %127 = vadd.xlane.f32.xlu0 %v126_v58  ;;  %v150_v50 = vsel %vm122_vm1, %v115_v42, 0.0  ;;  %v147_v51 = vsel %vm122_vm1, %v114_v43, 0.0  ;;  %v104_v57 = vsub.f32 %v84_v55, %v358_v40  ;;  %v119_v60 = vmul.f32 %v103_v48, %v103_v48  ;;  %v174_v42 = vld [vmem:[#allocation2 + $0x18] sm:$0xff]  ;;  %v172_v43 = vld [vmem:[#allocation2 + $0x8] sm:$0xff]  ;;  %v177_v55 = vld [vmem:[#allocation2 + $0x30] sm:$0xff] }
  0x17   : > { %v156_v58 = vsel %vm122_vm1, %v117_v52, 0.0  ;;  %v153_v59 = vsel %vm122_vm1, %v116_v53, 0.0  ;;  %v118_v61 = vmul.f32 %v102_v49, %v102_v49  ;;  %v121_v0 = vmul.f32 %v105_v56, %v105_v56  ;;  %v176_v48 = vld [vmem:[#allocation2 + $0x28] sm:$0xff]  ;;  %v175_v49 = vld [vmem:[#allocation2 + $0x20] sm:$0xff] }
  0x18   : > { %v162_v62 = vsel %vm122_vm1, %v119_v60, 0.0  ;;  %v180_v60 = vld [vmem:[#allocation2 + $0x48] sm:$0xff] }
  0x19   : > { %v159_v63 = vsel %vm122_vm1, %v118_v61, 0.0  ;;  %v179_v61 = vld [vmem:[#allocation2 + $0x40] sm:$0xff] }
  0x1a   : > { %139 = vadd.xlane.f32.xlu1 %v138_v1  ;;  %136 = vadd.xlane.f32.xlu0 %v135_v34  ;;  %v120_v1 = vmul.f32 %v104_v57, %v104_v57  ;;  %v168_v34 = vsel %vm122_vm1, %v121_v0, 0.0 }
  0x1c   : > { %v165_v40 = vsel %vm122_vm1, %v120_v1, 0.0 }
  0x1e   : > { %145 = vadd.xlane.f32.xlu1 %v144_v39  ;;  %142 = vadd.xlane.f32.xlu0 %v141_v41 }
  0x22   : > { %151 = vadd.xlane.f32.xlu1 %v150_v50  ;;  %148 = vadd.xlane.f32.xlu0 %v147_v51 }
  0x26   : > { %157 = vadd.xlane.f32.xlu1 %v156_v58  ;;  %154 = vadd.xlane.f32.xlu0 %v153_v59 }
  0x2a   : > { %163 = vadd.xlane.f32.xlu1 %v162_v62  ;;  %160 = vadd.xlane.f32.xlu0 %v159_v63 }
  0x2e   : > { %169 = vadd.xlane.f32.xlu1 %v168_v34  ;;  %166 = vadd.xlane.f32.xlu0 %v165_v40  ;;  %v182_v34 = vld [vmem:[#allocation2 + $0x58] sm:$0xff]  ;;  %v181_v40 = vld [vmem:[#allocation2 + $0x50] sm:$0xff] }
  0x9f   : > { %v131_v37 = vpop.xlane.xlu1 %130  ;;  %v125_v38 = vpop.xlane.xlu0 %124 }
  0xa0   : > { %v582_v39 = vmin.f32 %v173_v35, %v131_v37  ;;  %v584_v41 = vmin.f32 %v171_v36, %v125_v38 }
  0xa2   : > { %205 = vst.msk [vmem:[#allocation2 + $0x10] sm:$0xff] %vm783_vm0, %v582_v39  ;;  %203 = vst.msk [vmem:[#allocation2] sm:$0xff] %vm783_vm0, %v584_v41 }
  0xa3   : > { %v134_v44 = vpop.xlane.xlu1 %133  ;;  %v128_v45 = vpop.xlane.xlu0 %127 }
  0xa4   : > { %v590_v46 = vmin.f32 %v174_v42, %v134_v44  ;;  %v592_v47 = vmin.f32 %v172_v43, %v128_v45  ;;  %v184_v42 = vld [vmem:[#allocation2 + $0x68] sm:$0xff]  ;;  %v183_v43 = vld [vmem:[#allocation2 + $0x60] sm:$0xff] }
  0xa6   : > { %206 = vst.msk [vmem:[#allocation2 + $0x18] sm:$0xff] %vm783_vm0, %v590_v46  ;;  %204 = vst.msk [vmem:[#allocation2 + $0x8] sm:$0xff] %vm783_vm0, %v592_v47 }
  0xa7   : > { %v140_v50 = vpop.xlane.xlu1 %139  ;;  %v137_v51 = vpop.xlane.xlu0 %136 }
  0xa8   : > { %v598_v52 = vmin.f32 %v176_v48, %v140_v50  ;;  %v600_v53 = vmin.f32 %v175_v49, %v137_v51  ;;  %v219_v48 = vsel %vm783_vm0, %v584_v41, -inf  ;;  %v220_v49 = vsel %vm783_vm0, %v592_v47, -inf }
  0xaa   : > { %208 = vst.msk [vmem:[#allocation2 + $0x28] sm:$0xff] %vm783_vm0, %v598_v52  ;;  %207 = vst.msk [vmem:[#allocation2 + $0x20] sm:$0xff] %vm783_vm0, %v600_v53  ;;  %v225_v44 = vsel %vm783_vm0, %v598_v52, -inf  ;;  %v223_v45 = vsel %vm783_vm0, %v600_v53, -inf }
  0xab   : > { %v146_v56 = vpop.xlane.xlu1 %145  ;;  %v143_v57 = vpop.xlane.xlu0 %142 }
  0xac   : > { %v606_v58 = vmin.f32 %v178_v54, %v146_v56  ;;  %v608_v59 = vmin.f32 %v177_v55, %v143_v57 }
  0xae   : > { %210 = vst.msk [vmem:[#allocation2 + $0x38] sm:$0xff] %vm783_vm0, %v606_v58  ;;  %209 = vst.msk [vmem:[#allocation2 + $0x30] sm:$0xff] %vm783_vm0, %v608_v59  ;;  %v229_v50 = vsel %vm783_vm0, %v606_v58, -inf  ;;  %v227_v51 = vsel %vm783_vm0, %v608_v59, -inf }
  0xaf   : > { %v152_v62 = vpop.xlane.xlu1 %151  ;;  %v149_v63 = vpop.xlane.xlu0 %148 }
  0xb0   : > { %v614_v0 = vmin.f32 %v180_v60, %v152_v62  ;;  %v616_v1 = vmin.f32 %v179_v61, %v149_v63  ;;  %v221_v62 = vsel %vm783_vm0, %v582_v39, -inf  ;;  %v222_v63 = vsel %vm783_vm0, %v590_v46, -inf }
  0xb2   : > { %212 = vst.msk [vmem:[#allocation2 + $0x48] sm:$0xff] %vm783_vm0, %v614_v0  ;;  %211 = vst.msk [vmem:[#allocation2 + $0x40] sm:$0xff] %vm783_vm0, %v616_v1  ;;  %v233_v56 = vsel %vm783_vm0, %v614_v0, -inf  ;;  %v231_v57 = vsel %vm783_vm0, %v616_v1, -inf }
  0xb3   : > { %v158_v35 = vpop.xlane.xlu1 %157  ;;  %v155_v36 = vpop.xlane.xlu0 %154 }
  0xb4   : > { %v622_v37 = vmin.f32 %v182_v34, %v158_v35  ;;  %v624_v38 = vmin.f32 %v181_v40, %v155_v36  ;;  %v226_v34 = vmax.f32 %v220_v49, %v225_v44  ;;  %v224_v40 = vmax.f32 %v219_v48, %v223_v45  ;;  %v186_v35 = vld [vmem:[#allocation2 + $0x78] sm:$0xff]  ;;  %v185_v36 = vld [vmem:[#allocation2 + $0x70] sm:$0xff] }
  0xb5   : > { %v230_v44 = vmax.f32 %v222_v63, %v229_v50  ;;  %v228_v45 = vmax.f32 %v221_v62, %v227_v51 }
  0xb6   : > { %214 = vst.msk [vmem:[#allocation2 + $0x58] sm:$0xff] %vm783_vm0, %v622_v37  ;;  %213 = vst.msk [vmem:[#allocation2 + $0x50] sm:$0xff] %vm783_vm0, %v624_v38  ;;  %v237_v33 = vsel %vm783_vm0, %v622_v37, -inf  ;;  %v235_v32 = vsel %vm783_vm0, %v624_v38, -inf  ;;  %v234_v48 = vmax.f32 %v226_v34, %v233_v56  ;;  %v232_v49 = vmax.f32 %v224_v40, %v231_v57 }
  0xb7   : > { %v164_v54 = vpop.xlane.xlu1 %163  ;;  %v161_v55 = vpop.xlane.xlu0 %160  ;;  %v238_v29 = vmax.f32 %v230_v44, %v237_v33  ;;  %v236_v28 = vmax.f32 %v228_v45, %v235_v32  ;;  %v787_v44 = vcvt.s32.f32 %v471_v11  ;;  %v788_v45 = vcvt.s32.f32 %v474_v12 }
  0xb8   : > { %v646_v60 = vmin.f32 %v184_v42, %v164_v54  ;;  %v648_v61 = vmin.f32 %v183_v43, %v161_v55 }
  0xba   : > { %216 = vst.msk [vmem:[#allocation2 + $0x68] sm:$0xff] %vm783_vm0, %v646_v60  ;;  %v241_v42 = vsel %vm783_vm0, %v646_v60, -inf  ;;  %215 = vst.msk [vmem:[#allocation2 + $0x60] sm:$0xff] %vm783_vm0, %v648_v61  ;;  %v239_v43 = vsel %vm783_vm0, %v648_v61, -inf }
  0xbb   : > { %v170_v54 = vpop.xlane.xlu1 %169  ;;  %v167_v55 = vpop.xlane.xlu0 %166  ;;  %v240_v27 = vmax.f32 %v232_v49, %v239_v43  ;;  %v242_v26 = vmax.f32 %v234_v48, %v241_v42  ;;  %v786_v43 = vcvt.s32.f32 %v468_v10  ;;  %v789_v48 = vcvt.s32.f32 %v477_v13 }
  0xbc   : > { %v202_v31 = vmin.f32 %v186_v35, %v170_v54  ;;  %v201_v30 = vmin.f32 %v185_v36, %v167_v55  ;;  %v790_v49 = vcvt.s32.f32 %v480_v14  ;;  %v791_v54 = vcvt.s32.f32 %v483_v15 }
  0xbd   : > { %v247_v56 = vmax.f32 %v240_v27, %v242_v26  ;;  %v792_v55 = vcvt.s32.f32 %v486_v16 }
  0xbe   : > { %218 = vst.msk [vmem:[#allocation2 + $0x78] sm:$0xff] %vm783_vm0, %v202_v31  ;;  %v245_v25 = vsel %vm783_vm0, %v202_v31, -inf  ;;  %217 = vst.msk [vmem:[#allocation2 + $0x70] sm:$0xff] %vm783_vm0, %v201_v30  ;;  %v243_v24 = vsel %vm783_vm0, %v201_v30, -inf }
  0xbf   : > { %v244_v50 = vmax.f32 %v236_v28, %v243_v24  ;;  %v246_v51 = vmax.f32 %v238_v29, %v245_v25 }
  0xc1   : > { %v248_v57 = vmax.f32 %v244_v50, %v246_v51  ;;  %v793_v50 = vcvt.s32.f32 %v489_v17 }
  0xc3   : > { %v249_v62 = vmax.f32 %v247_v56, %v248_v57 }
  0xc5   : > { %250 = vmax.xlane.f32.xlu0 %v249_v62 }
 0x152   : > { %v251_v63 = vpop.xlane.xlu0 %250 }
 0x153   : > { %v252_v34 = vrot.slane %v251_v63, 4 }
 0x155   : > { %v253_v33 = vmax.f32 %v251_v63, %v252_v34 }
 0x157   : > { %v254_v32 = vrot.slane %v253_v33, 2 }
 0x159   : > { %v255_v40 = vmax.f32 %v253_v33, %v254_v32 }
 0x15b   : > { %v256_v35 = vrot.slane %v255_v40, 1 }
 0x15d   : > { %v257_v36 = vmax.f32 %v255_v40, %v256_v35 }
 0x15f   : > { %359 = vpush %v257_v36 }
 0x190   : > { %s360_s16 = spop %359 }
 0x191   : > { %v259_v42 = vstv %s360_s16 }
 0x192   : > { %vm260_vm2 = vcmp.eq.f32.partialorder %v584_v41, %v259_v42  ;;  %vm261_vm3 = vcmp.eq.f32.partialorder %v592_v47, %v259_v42  ;;  %vm262_vm4 = vcmp.eq.f32.partialorder %v582_v39, %v259_v42  ;;  %vm263_vm5 = vcmp.eq.f32.partialorder %v590_v46, %v259_v42 }
 0x193   : > { %vm264_vm6 = vcmp.eq.f32.partialorder %v600_v53, %v259_v42  ;;  %vm265_vm7 = vcmp.eq.f32.partialorder %v598_v52, %v259_v42  ;;  %vm266_vm8 = vcmp.eq.f32.partialorder %v608_v59, %v259_v42  ;;  %vm267_vm9 = vcmp.eq.f32.partialorder %v606_v58, %v259_v42 }
 0x194   : > { %vm268_vm10 = vcmp.eq.f32.partialorder %v616_v1, %v259_v42  ;;  %vm269_vm11 = vcmp.eq.f32.partialorder %v614_v0, %v259_v42  ;;  %vm270_vm12 = vcmp.eq.f32.partialorder %v624_v38, %v259_v42  ;;  %vm271_vm13 = vcmp.eq.f32.partialorder %v622_v37, %v259_v42 }
 0x195   : > { %vm272_vm14 = vcmp.eq.f32.partialorder %v648_v61, %v259_v42  ;;  %vm273_vm15 = vcmp.eq.f32.partialorder %v646_v60, %v259_v42  ;;  %vm274_vm1 = vcmp.eq.f32.partialorder %v201_v30, %v259_v42  ;;  %vm275_vm0 = vcmp.eq.f32.partialorder %v202_v31, %v259_v42 }
 0x196   : > { %v276_v24 = vsel %vm260_vm2, %v45_v18, 128.0  ;;  %v277_v25 = vsel %vm261_vm3, %v46_v19, 128.0  ;;  %v278_v26 = vsel %vm262_vm4, %v47_v20, 128.0  ;;  %v279_v27 = vsel %vm263_vm5, %v48_v21, 128.0 }
 0x197   : > { %v280_v28 = vsel %vm264_vm6, %v49_v22, 128.0  ;;  %v281_v29 = vsel %vm265_vm7, %v50_v23, 128.0  ;;  %v784_v41 = vcvt.s32.f32 %v462_v8  ;;  %v785_v47 = vcvt.s32.f32 %v465_v9 }
 0x198   : > { %v284_v53 = vsel %vm268_vm10, %v786_v43, 128.0  ;;  %v285_v52 = vsel %vm269_vm11, %v787_v44, 128.0  ;;  %v286_v59 = vsel %vm270_vm12, %v788_v45, 128.0  ;;  %v287_v58 = vsel %vm271_vm13, %v789_v48, 128.0 }
 0x199   : > { %v282_v39 = vsel %vm266_vm8, %v784_v41, 128.0  ;;  %v283_v46 = vsel %vm267_vm9, %v785_v47, 128.0  ;;  %v288_v1 = vsel %vm272_vm14, %v790_v49, 128.0  ;;  %v289_v0 = vsel %vm273_vm15, %v791_v54, 128.0 }
 0x19a   : > { %v290_v38 = vsel %vm274_vm1, %v792_v55, 128.0  ;;  %v291_v51 = vsel %vm275_vm0, %v793_v50, 128.0  ;;  %vm794_vm2 = vcmask 7168  }
 0x19b   : > { %v292_v37 = vsel %vm794_vm2, %v276_v24, inf  ;;  %vm795_vm3 = vmmov %vm794_vm2 }
 0x19c   : > { %v293_v56 = vsel %vm795_vm3, %v277_v25, inf  ;;  %vm796_vm4 = vmmov %vm794_vm2 }
 0x19d   : > { %v294_v61 = vsel %vm796_vm4, %v278_v26, inf  ;;  %vm797_vm5 = vmmov %vm794_vm2 }
 0x19e   : > { %v295_v57 = vsel %vm797_vm5, %v279_v27, inf  ;;  %vm798_vm6 = vmmov %vm794_vm2 }
 0x19f   : > { %v296_v62 = vsel %vm798_vm6, %v280_v28, inf  ;;  %vm799_vm7 = vmmov %vm794_vm2 }
 0x1a0   : > { %v298_v60 = vsel %vm799_vm7, %v281_v29, inf  ;;  %vm800_vm8 = vmmov %vm794_vm2  ;;  %v297_v34 = vmin.f32 %v292_v37, %v296_v62 }
 0x1a1   : > { %v300_v63 = vsel %vm800_vm8, %v282_v39, inf  ;;  %vm801_vm9 = vmmov %vm794_vm2  ;;  %v299_v33 = vmin.f32 %v293_v56, %v298_v60 }
 0x1a2   : > { %v302_v30 = vsel %vm801_vm9, %v283_v46, inf  ;;  %v301_v31 = vmin.f32 %v294_v61, %v300_v63  ;;  %vm802_vm0 = vmmov %vm794_vm2 }
 0x1a3   : > { %v303_v32 = vmin.f32 %v295_v57, %v302_v30  ;;  %v304_v40 = vsel %vm802_vm0, %v284_v53, inf  ;;  %vm803_vm10 = vmmov %vm802_vm0 }
 0x1a4   : > { %v306_v35 = vsel %vm803_vm10, %v285_v52, inf  ;;  %vm804_vm11 = vmmov %vm802_vm0  ;;  %v305_v24 = vmin.f32 %v297_v34, %v304_v40 }
 0x1a5   : > { %v308_v36 = vsel %vm804_vm11, %v286_v59, inf  ;;  %vm805_vm12 = vmmov %vm802_vm0  ;;  %v307_v25 = vmin.f32 %v299_v33, %v306_v35 }
 0x1a6   : > { %v310_v42 = vsel %vm805_vm12, %v287_v58, inf  ;;  %v309_v26 = vmin.f32 %v301_v31, %v308_v36  ;;  %vm806_vm13 = vmmov %vm802_vm0 }
 0x1a7   : > { %v311_v27 = vmin.f32 %v303_v32, %v310_v42  ;;  %v312_v28 = vsel %vm806_vm13, %v288_v1, inf  ;;  %vm807_vm14 = vmmov %vm802_vm0 }
 0x1a8   : > { %v314_v29 = vsel %vm807_vm14, %v289_v0, inf  ;;  %vm808_vm15 = vmmov %vm802_vm0  ;;  %v313_v47 = vmin.f32 %v305_v24, %v312_v28 }
 0x1a9   : > { %v316_v41 = vsel %vm808_vm15, %v290_v38, inf  ;;  %vm809_vm1 = vmmov %vm802_vm0  ;;  %v315_v46 = vmin.f32 %v307_v25, %v314_v29 }
 0x1aa   : > { %v318_v39 = vsel %vm809_vm1, %v291_v51, inf  ;;  %v317_v43 = vmin.f32 %v309_v26, %v316_v41 }
 0x1ab   : > { %v319_v53 = vmin.f32 %v311_v27, %v318_v39  ;;  %v320_v44 = vmin.f32 %v313_v47, %v315_v46 }
 0x1ad   : > { %v321_v52 = vmin.f32 %v317_v43, %v319_v53 }
 0x1af   : > { %v322_v45 = vmin.f32 %v320_v44, %v321_v52 }
 0x1b1   : > { %323 = vmin.xlane.f32.xlu1 %v322_v45 }
 0x23e   : > { %v324_v59 = vpop.xlane.xlu1 %323 }
 0x23f   : > { %v325_v48 = vrot.slane %v324_v59, 4 }
 0x241   : > { %v326_v58 = vmin.f32 %v324_v59, %v325_v48 }
 0x243   : > { %v327_v49 = vrot.slane %v326_v58, 2 }
 0x245   : > { %v328_v1 = vmin.f32 %v326_v58, %v327_v49 }
 0x247   : > { %v329_v54 = vrot.slane %v328_v1, 1 }
 0x249   : > { %v330_v0 = vmin.f32 %v328_v1, %v329_v54 }
 0x24b   : > { %361 = vpush %v330_v0 }
 0x27c   : > { %s362_s17 = spop %361  ;;  %65 = sbr.rel (!%p63_p1) target bundleno = 10 (0xa), region = 34 }
 0x27d   : > { %p363_p0 = scmp.lt.s32.totalorder %s362_s17, 0  ;;  %s364_s18 = sceil.f32 %s362_s17 }
 0x27e   : > { %s365_s19 = sfloor.f32 %s362_s17 }
 0x27f   : > { %s811_s18 = smov (!%p363_p0, %s364_s18), %s365_s19 }
 0x280   : > { %s367_s7 = scvt.f32.s32 %s811_s18  }
 0x282   : > { %334 = sst [smem:[%s333_s20]] %s367_s7 }
 0x283   :  { %396 = shalt.err (!%p393_p4)
}
 0x284   :  { %s417_s28 = smov [#allocation3]  }
 0x285   :  { %342 = dma.smem_to_hbm %s417_s28, 16, %s781_s1, [#allocation4]  }
 0x286   :  { %405 = dma.done.wait [#allocation4], 16  }
 0x287   :  { %406 = vsyncadd [#allocation4], 4294967280 }
 0x288   :  { %346 = sfence }
 0x289   :  { %347 = vsyncpa [#allocation4], 1 }

</bundles_post_ra>
